<compile_context>
chip_gen: v5e
topology: v5e:2x2
jax: 0.10.0
libtpu: 0.0.40
codegen_flags: <defaults>
</compile_context>

<pallas_src>
import functools

import jax
import jax.numpy as jnp
import numpy as np
from jax.experimental import pallas as pl
from jax.experimental.pallas import tpu as pltpu


def _round_up(v, m):
    return (v + m - 1) // m * m


def _cdiv(a, b):
    return (a + b - 1) // b


def _static_pow(base, gamma):
    """base**gamma with small integer gamma lowered to VPU multiplies; falls back to
    jnp.power (EUP) only for non-integer / large gammas."""
    g = float(gamma)
    if g.is_integer() and 0.0 <= g <= 4.0:
        gi = int(g)
        if gi == 0:
            return 1.0
        out = base
        for _ in range(gi - 1):
            out = out * base
        return out
    return jnp.power(base, g)


def _running_max(w_ref, mt_ref, run_ref, n_c, k_slab, num_slabs):
    """run[b, k] = max(run[b, k], max_{c < n_c} w[b, c] * mask_T[c, k]).

    Slab-wise over lanes so the live accumulator stays register-resident; w columns and
    mask^T rows are sliced from their refs just-in-time (short live ranges, vld slots).
    The per-c (b_tile, 1) -> (b_tile, k_slab) lane-broadcast is XLU work hidden under the
    2-VALU-ops-per-(b,c,k) floor.
    """
    for s in range(num_slabs):                       # static loop over lane slabs
        k0 = s * k_slab
        acc = run_ref[:, k0:k0 + k_slab]             # (b_tile, k_slab) accumulator
        for c in range(n_c):                         # static unroll (<= 128 per chunk)
            acc = jnp.maximum(acc,
                              w_ref[:, c:c + 1] * mt_ref[c:c + 1, k0:k0 + k_slab])
        run_ref[:, k0:k0 + k_slab] = acc


def _mcl_kernel(x_ref, y_ref, w_ref, mt_ref, out_ref, run_ref, *,
                gamma_neg, gamma_pos, c_chunk, c_tail, b_tile, c_pad, k_slab,
                nc, n_rows, n_cols):
    i = pl.program_id(0)                  # batch tile (parallel)
    j = pl.program_id(1)                  # source-class chunk (reduction axis)
    num_slabs = c_pad // k_slab
    needs_row_mask = (n_rows % b_tile) != 0    # static python bools
    needs_col_mask = (n_cols % 128) != 0

    @pl.when(j == 0)
    def _init():
        # -inf init + iterating only real source classes => exact reference max
        # (padded k columns still end at 0 because their mask^T entries are 0).
        run_ref[...] = jnp.full((b_tile, c_pad), -jnp.inf, jnp.float32)

    # Running masked max over this chunk's REAL source classes; the last chunk is
    # specialized to its true length so padded source classes do zero work.
    if nc > 1 and c_tail != c_chunk:
        @pl.when(j != nc - 1)
        def _full_chunk():
            _running_max(w_ref, mt_ref, run_ref, c_chunk, k_slab, num_slabs)

        @pl.when(j == nc - 1)
        def _tail_chunk():
            _running_max(w_ref, mt_ref, run_ref, c_tail, k_slab, num_slabs)
    else:
        _running_max(w_ref, mt_ref, run_ref,
                     c_chunk if nc > 1 else c_tail, k_slab, num_slabs)

    @pl.when(j == nc - 1)
    def _finalize():
        # Stream 8-row x k_slab sub-tiles: bounded vreg pressure, lane-dense output.
        for s in range(num_slabs):
            k0 = s * k_slab
            part = jnp.zeros((8, k_slab), jnp.float32)
            for rb in range(b_tile // 8):
                r0 = rb * 8
                xs = x_ref[r0:r0 + 8, k0:k0 + k_slab]
                ys = y_ref[r0:r0 + 8, k0:k0 + k_slab]
                mx = run_ref[r0:r0 + 8, k0:k0 + k_slab]
                x_prep = (1.0 - ys) * xs + ys * mx
                # No eps clamp (parity with the reference): a positive class with an
                # empty masked set gives x_prep = 0 and log(0) = -inf, same as torch.
                loss = (ys * _static_pow(1.0 - x_prep, gamma_pos) * jnp.log(x_prep)
                        + (1.0 - ys) * _static_pow(x_prep, gamma_neg)
                        * jnp.log(1.0 - x_prep))
                if needs_row_mask or needs_col_mask:
                    keep = None
                    if needs_row_mask:
                        row = (i * b_tile + r0
                               + jax.lax.broadcasted_iota(jnp.int32, (8, k_slab), 0))
                        keep = row < n_rows
                    if needs_col_mask:
                        col = k0 + jax.lax.broadcasted_iota(jnp.int32, (8, k_slab), 1)
                        cond = col < n_cols
                        keep = cond if keep is None else (keep & cond)
                    loss = jnp.where(keep, loss, 0.0)
                part = part + loss
            out_ref[:, k0:k0 + k_slab] = part


def mcl_loss(x, y, mask, gamma_neg=0, gamma_pos=0, *, b_tile=None, c_chunk=128,
             interpret=False):
    """Pallas MCL forward. x, y: (B, C); mask: (C, C). Returns a scalar f32 loss."""
    x = jnp.asarray(x, jnp.float32)
    y = jnp.asarray(y, jnp.float32)
    mask = jnp.asarray(mask, jnp.float32)
    B, C = x.shape
    assert y.shape == (B, C) and mask.shape == (C, C)

    # --- tiling choices --------------------------------------------------------
    c_pad = _round_up(C, 128)                       # lane-dense class dimension
    c_chunk = max(128, min(_round_up(c_chunk, 128), c_pad))
    while c_pad % c_chunk:                          # keep chunks lane-group aligned
        c_chunk -= 128
    nc = _cdiv(C, c_chunk)                          # == c_pad // c_chunk
    c_tail = C - (nc - 1) * c_chunk                 # true length of the last chunk

    if b_tile is None:
        # Minimize batch padding; use >= 2 batch tiles whenever B > 8 so the
        # "parallel" axis feeds both v7x TensorCores (harmless on v5e/v6e).
        nb_target = max(_cdiv(B, 64), 2 if B > 8 else 1)
        b_tile = _round_up(_cdiv(B, nb_target), 8)
    b_tile = max(8, _round_up(b_tile, 8))
    nb = _cdiv(B, b_tile)
    b_pad = nb * b_tile

    # Lane-slab width: keep the live running-max accumulator to <= ~24 vregs
    # ((b_tile/8) * (k_slab/128) vregs) so the inner loop never spills.
    k_slab = min(512, max(128, (24576 // b_tile) // 128 * 128), c_pad)
    while c_pad % k_slab:
        k_slab -= 128

    # --- host-side operand prep (padding skipped entirely when aligned) ---------
    if b_pad == B and c_pad == C:
        x_p, y_p = x, y
    else:
        # Pad x with 0.5 (keeps logs finite on padded entries), y / mask with 0;
        # padded rows/columns are excluded from the loss inside the kernel.
        x_p = jnp.full((b_pad, c_pad), 0.5, jnp.float32).at[:B, :C].set(x)
        y_p = jnp.zeros((b_pad, c_pad), jnp.float32).at[:B, :C].set(y)
    w_p = x_p * x_p * y_p                           # natural (b, c) layout, one fused op
    if c_pad == C:
        m_t = mask.T                                # m_t[c, k] = mask[k, c]
    else:
        m_t = jnp.zeros((c_pad, c_pad), jnp.float32).at[:C, :C].set(mask).T

    # --- pallas call -------------------------------------------------------------
    kernel = functools.partial(
        _mcl_kernel, gamma_neg=gamma_neg, gamma_pos=gamma_pos,
        c_chunk=c_chunk, c_tail=c_tail, b_tile=b_tile, c_pad=c_pad,
        k_slab=k_slab, nc=nc, n_rows=B, n_cols=C)

    grid_spec = pltpu.PrefetchScalarGridSpec(
        num_scalar_prefetch=0,
        grid=(nb, nc),
        in_specs=[
            pl.BlockSpec((b_tile, c_pad), lambda i, j: (i, 0)),    # x (resident over j)
            pl.BlockSpec((b_tile, c_pad), lambda i, j: (i, 0)),    # y (resident over j)
            pl.BlockSpec((b_tile, c_chunk), lambda i, j: (i, j)),  # w = x^2*y chunk
            pl.BlockSpec((c_chunk, c_pad), lambda i, j: (j, 0)),   # mask^T chunk
        ],
        out_specs=pl.BlockSpec((8, c_pad), lambda i, j: (i, 0)),
        scratch_shapes=[pltpu.VMEM((b_tile, c_pad), jnp.float32)],  # running max
    )

    # VMEM budget from the actual buffer sizes (double-buffered ins/outs + scratch)
    # with slack; stays far under the 64 MiB v7x ceiling for sane shapes.
    vmem_need = 4 * (2 * 2 * b_tile * c_pad        # x, y
                     + 2 * b_tile * c_chunk        # w chunk
                     + 2 * c_chunk * c_pad         # mask^T chunk
                     + 2 * 8 * c_pad               # partial-sum output
                     + b_tile * c_pad)             # running-max scratch
    vmem_limit = int(min(max(vmem_need + (2 << 20), 16 << 20), 112 << 20))

    partial = pl.pallas_call(
        kernel,
        out_shape=jax.ShapeDtypeStruct((nb * 8, c_pad), jnp.float32),
        grid_spec=grid_spec,
        compiler_params=pltpu.CompilerParams(
            dimension_semantics=("parallel", "arbitrary"),
            vmem_limit_bytes=vmem_limit,
        ),
        cost_estimate=pl.CostEstimate(
            flops=2 * b_pad * C * c_pad + 12 * b_pad * c_pad,
            transcendentals=2 * b_pad * c_pad,
            bytes_accessed=4 * (4 * b_pad * c_pad + nb * c_pad * c_pad + nb * 8 * c_pad),
        ),
        interpret=interpret,
    )(x_p, y_p, w_p, m_t)

    # Single division by the TRUE element count (padded entries were zeroed in-kernel).
    return -jnp.sum(partial) / (B * C)


def mcl_loss_ref(x, y, mask, gamma_neg=0, gamma_pos=0):
    """Pure-JAX reference mirroring the PyTorch module."""
    masked = mask[None, :, :] * x[:, None, :]            # (B, C, C): mask[k,c]*x[b,c]
    out_y = (x * y)[:, None, :]                          # (B, 1, C)
    max_masked_outy = jnp.max(masked * out_y, axis=2)    # (B, C)
    x_prep = (1.0 - y) * x + y * max_masked_outy
    loss_pos = y * jnp.power(1.0 - x_prep, gamma_pos) * jnp.log(x_prep)
    loss_neg = (1.0 - y) * jnp.power(x_prep, gamma_neg) * jnp.log(1.0 - x_prep)
    return -jnp.mean(loss_pos + loss_neg)


def _check(B, C, gamma_neg, gamma_pos, seed):
    key = jax.random.fold_in(jax.random.PRNGKey(0), seed)
    kx, ky, km = jax.random.split(key, 3)
    # x = predicted probabilities in (0, 1); y = binary multi-label targets.
    x = jax.nn.sigmoid(jax.random.normal(kx, (B, C), dtype=jnp.float32))
    y = (jax.random.uniform(ky, (B, C)) < 0.4).astype(jnp.float32)
    # binary constraint matrix with ones on the diagonal (positives always have a
    # non-empty masked set -> finite log), as in the intended use of the module.
    mask = (jax.random.uniform(km, (C, C)) < 0.3).astype(jnp.float32)
    mask = jnp.maximum(mask, jnp.eye(C, dtype=jnp.float32))

    got = jax.block_until_ready(mcl_loss(x, y, mask, gamma_neg, gamma_pos))
    want = jax.block_until_ready(mcl_loss_ref(x, y, mask, gamma_neg, gamma_pos))
    assert np.isfinite(float(got)), f"non-finite loss: {got}"
    np.testing.assert_allclose(np.asarray(got), np.asarray(want), rtol=1e-5, atol=1e-6)


if __name__ == "__main__":
    _check(B=8, C=16, gamma_neg=2, gamma_pos=1, seed=0)    # integer gammas -> VPU multiplies
    _check(B=5, C=10, gamma_neg=0, gamma_pos=0, seed=1)    # batch/class padding path
    _check(B=24, C=300, gamma_neg=3, gamma_pos=2, seed=2)  # multi batch tile + tail chunk
    print("KERNEL_OK")
</pallas_src>

<mosaic_0001>
module attributes {stable_mosaic.version = 11 : i64} {
  func.func @_mcl_kernel(%arg0: i32, %arg1: i32, %arg2: memref<8x128xf32, #tpu.memory_space<vmem>>, %arg3: memref<8x128xf32, #tpu.memory_space<vmem>>, %arg4: memref<8x128xf32, #tpu.memory_space<vmem>>, %arg5: memref<128x128xf32, #tpu.memory_space<vmem>>, %arg6: memref<8x128xf32, #tpu.memory_space<vmem>>, %arg7: memref<8x128xf32, #tpu.memory_space<vmem>>) attributes {dimension_semantics = [#tpu.dimension_semantics<parallel>, #tpu.dimension_semantics<arbitrary>], iteration_bounds = array<i64: 1, 1>, scalar_prefetch = 0 : i64, scratch_operands = 1 : i64, tpu.core_type = #tpu.core_type<tc>, window_params = [{transform_indices = @transform_0, window_bounds = array<i64: 8, 128>}, {transform_indices = @transform_1, window_bounds = array<i64: 8, 128>}, {transform_indices = @transform_2, window_bounds = array<i64: 8, 128>}, {transform_indices = @transform_3, window_bounds = array<i64: 128, 128>}, {transform_indices = @transform_4, window_bounds = array<i64: 8, 128>}]} {
    %c0_i32 = arith.constant 0 : i32
    %0 = arith.cmpi eq, %arg1, %c0_i32 : i32
    %1 = arith.extui %0 : i1 to i32
    %c0_i32_0 = arith.constant 0 : i32
    %2 = arith.cmpi ne, %1, %c0_i32_0 : i32
    scf.if %2 {
      %cst = arith.constant 0xFF800000 : f32
      %104 = vector.broadcast %cst : f32 to vector<8x128xf32>
      %c0_55 = arith.constant 0 : index
      %c0_56 = arith.constant 0 : index
      %105 = vector.load %arg7[%c0_55, %c0_56] : memref<8x128xf32, #tpu.memory_space<vmem>>, vector<8x128xf32>
      tpu.vector_store %arg7[%c0_55, %c0_56], %104 {strides = array<i32>} : memref<8x128xf32, #tpu.memory_space<vmem>>, vector<8x128xf32>,
    } else {
    }
    %c0 = arith.constant 0 : index
    %c0_1 = arith.constant 0 : index
    %3 = vector.load %arg7[%c0, %c0_1] : memref<8x128xf32, #tpu.memory_space<vmem>>, vector<8x128xf32>
    %c0_2 = arith.constant 0 : index
    %c0_3 = arith.constant 0 : index
    %4 = vector.load %arg4[%c0_2, %c0_3] : memref<8x128xf32, #tpu.memory_space<vmem>>, vector<8x1xf32>
    %c0_4 = arith.constant 0 : index
    %c0_5 = arith.constant 0 : index
    %5 = vector.load %arg5[%c0_4, %c0_5] : memref<128x128xf32, #tpu.memory_space<vmem>>, vector<1x128xf32>
    %6 = vector.broadcast %4 : vector<8x1xf32> to vector<8x128xf32>
    %7 = vector.broadcast %5 : vector<1x128xf32> to vector<8x128xf32>
    %8 = arith.mulf %6, %7 : vector<8x128xf32>
    %9 = arith.maximumf %3, %8 : vector<8x128xf32>
    %c0_6 = arith.constant 0 : index
    %c1 = arith.constant 1 : index
    %10 = vector.load %arg4[%c0_6, %c1] : memref<8x128xf32, #tpu.memory_space<vmem>>, vector<8x1xf32>
    %c1_7 = arith.constant 1 : index
    %c0_8 = arith.constant 0 : index
    %11 = vector.load %arg5[%c1_7, %c0_8] : memref<128x128xf32, #tpu.memory_space<vmem>>, vector<1x128xf32>
    %12 = vector.broadcast %10 : vector<8x1xf32> to vector<8x128xf32>
    %13 = vector.broadcast %11 : vector<1x128xf32> to vector<8x128xf32>
    %14 = arith.mulf %12, %13 : vector<8x128xf32>
    %15 = arith.maximumf %9, %14 : vector<8x128xf32>
    %c0_9 = arith.constant 0 : index
    %c2 = arith.constant 2 : index
    %16 = vector.load %arg4[%c0_9, %c2] : memref<8x128xf32, #tpu.memory_space<vmem>>, vector<8x1xf32>
    %c2_10 = arith.constant 2 : index
    %c0_11 = arith.constant 0 : index
    %17 = vector.load %arg5[%c2_10, %c0_11] : memref<128x128xf32, #tpu.memory_space<vmem>>, vector<1x128xf32>
    %18 = vector.broadcast %16 : vector<8x1xf32> to vector<8x128xf32>
    %19 = vector.broadcast %17 : vector<1x128xf32> to vector<8x128xf32>
    %20 = arith.mulf %18, %19 : vector<8x128xf32>
    %21 = arith.maximumf %15, %20 : vector<8x128xf32>
    %c0_12 = arith.constant 0 : index
    %c3 = arith.constant 3 : index
    %22 = vector.load %arg4[%c0_12, %c3] : memref<8x128xf32, #tpu.memory_space<vmem>>, vector<8x1xf32>
    %c3_13 = arith.constant 3 : index
    %c0_14 = arith.constant 0 : index
    %23 = vector.load %arg5[%c3_13, %c0_14] : memref<128x128xf32, #tpu.memory_space<vmem>>, vector<1x128xf32>
    %24 = vector.broadcast %22 : vector<8x1xf32> to vector<8x128xf32>
    %25 = vector.broadcast %23 : vector<1x128xf32> to vector<8x128xf32>
    %26 = arith.mulf %24, %25 : vector<8x128xf32>
    %27 = arith.maximumf %21, %26 : vector<8x128xf32>
    %c0_15 = arith.constant 0 : index
    %c4 = arith.constant 4 : index
    %28 = vector.load %arg4[%c0_15, %c4] : memref<8x128xf32, #tpu.memory_space<vmem>>, vector<8x1xf32>
    %c4_16 = arith.constant 4 : index
    %c0_17 = arith.constant 0 : index
    %29 = vector.load %arg5[%c4_16, %c0_17] : memref<128x128xf32, #tpu.memory_space<vmem>>, vector<1x128xf32>
    %30 = vector.broadcast %28 : vector<8x1xf32> to vector<8x128xf32>
    %31 = vector.broadcast %29 : vector<1x128xf32> to vector<8x128xf32>
    %32 = arith.mulf %30, %31 : vector<8x128xf32>
    %33 = arith.maximumf %27, %32 : vector<8x128xf32>
    %c0_18 = arith.constant 0 : index
    %c5 = arith.constant 5 : index
    %34 = vector.load %arg4[%c0_18, %c5] : memref<8x128xf32, #tpu.memory_space<vmem>>, vector<8x1xf32>
    %c5_19 = arith.constant 5 : index
    %c0_20 = arith.constant 0 : index
    %35 = vector.load %arg5[%c5_19, %c0_20] : memref<128x128xf32, #tpu.memory_space<vmem>>, vector<1x128xf32>
    %36 = vector.broadcast %34 : vector<8x1xf32> to vector<8x128xf32>
    %37 = vector.broadcast %35 : vector<1x128xf32> to vector<8x128xf32>
    %38 = arith.mulf %36, %37 : vector<8x128xf32>
    %39 = arith.maximumf %33, %38 : vector<8x128xf32>
    %c0_21 = arith.constant 0 : index
    %c6 = arith.constant 6 : index
    %40 = vector.load %arg4[%c0_21, %c6] : memref<8x128xf32, #tpu.memory_space<vmem>>, vector<8x1xf32>
    %c6_22 = arith.constant 6 : index
    %c0_23 = arith.constant 0 : index
    %41 = vector.load %arg5[%c6_22, %c0_23] : memref<128x128xf32, #tpu.memory_space<vmem>>, vector<1x128xf32>
    %42 = vector.broadcast %40 : vector<8x1xf32> to vector<8x128xf32>
    %43 = vector.broadcast %41 : vector<1x128xf32> to vector<8x128xf32>
    %44 = arith.mulf %42, %43 : vector<8x128xf32>
    %45 = arith.maximumf %39, %44 : vector<8x128xf32>
    %c0_24 = arith.constant 0 : index
    %c7 = arith.constant 7 : index
    %46 = vector.load %arg4[%c0_24, %c7] : memref<8x128xf32, #tpu.memory_space<vmem>>, vector<8x1xf32>
    %c7_25 = arith.constant 7 : index
    %c0_26 = arith.constant 0 : index
    %47 = vector.load %arg5[%c7_25, %c0_26] : memref<128x128xf32, #tpu.memory_space<vmem>>, vector<1x128xf32>
    %48 = vector.broadcast %46 : vector<8x1xf32> to vector<8x128xf32>
    %49 = vector.broadcast %47 : vector<1x128xf32> to vector<8x128xf32>
    %50 = arith.mulf %48, %49 : vector<8x128xf32>
    %51 = arith.maximumf %45, %50 : vector<8x128xf32>
    %c0_27 = arith.constant 0 : index
    %c8 = arith.constant 8 : index
    %52 = vector.load %arg4[%c0_27, %c8] : memref<8x128xf32, #tpu.memory_space<vmem>>, vector<8x1xf32>
    %c8_28 = arith.constant 8 : index
    %c0_29 = arith.constant 0 : index
    %53 = vector.load %arg5[%c8_28, %c0_29] : memref<128x128xf32, #tpu.memory_space<vmem>>, vector<1x128xf32>
    %54 = vector.broadcast %52 : vector<8x1xf32> to vector<8x128xf32>
    %55 = vector.broadcast %53 : vector<1x128xf32> to vector<8x128xf32>
    %56 = arith.mulf %54, %55 : vector<8x128xf32>
    %57 = arith.maximumf %51, %56 : vector<8x128xf32>
    %c0_30 = arith.constant 0 : index
    %c9 = arith.constant 9 : index
    %58 = vector.load %arg4[%c0_30, %c9] : memref<8x128xf32, #tpu.memory_space<vmem>>, vector<8x1xf32>
    %c9_31 = arith.constant 9 : index
    %c0_32 = arith.constant 0 : index
    %59 = vector.load %arg5[%c9_31, %c0_32] : memref<128x128xf32, #tpu.memory_space<vmem>>, vector<1x128xf32>
    %60 = vector.broadcast %58 : vector<8x1xf32> to vector<8x128xf32>
    %61 = vector.broadcast %59 : vector<1x128xf32> to vector<8x128xf32>
    %62 = arith.mulf %60, %61 : vector<8x128xf32>
    %63 = arith.maximumf %57, %62 : vector<8x128xf32>
    %c0_33 = arith.constant 0 : index
    %c10 = arith.constant 10 : index
    %64 = vector.load %arg4[%c0_33, %c10] : memref<8x128xf32, #tpu.memory_space<vmem>>, vector<8x1xf32>
    %c10_34 = arith.constant 10 : index
    %c0_35 = arith.constant 0 : index
    %65 = vector.load %arg5[%c10_34, %c0_35] : memref<128x128xf32, #tpu.memory_space<vmem>>, vector<1x128xf32>
    %66 = vector.broadcast %64 : vector<8x1xf32> to vector<8x128xf32>
    %67 = vector.broadcast %65 : vector<1x128xf32> to vector<8x128xf32>
    %68 = arith.mulf %66, %67 : vector<8x128xf32>
    %69 = arith.maximumf %63, %68 : vector<8x128xf32>
    %c0_36 = arith.constant 0 : index
    %c11 = arith.constant 11 : index
    %70 = vector.load %arg4[%c0_36, %c11] : memref<8x128xf32, #tpu.memory_space<vmem>>, vector<8x1xf32>
    %c11_37 = arith.constant 11 : index
    %c0_38 = arith.constant 0 : index
    %71 = vector.load %arg5[%c11_37, %c0_38] : memref<128x128xf32, #tpu.memory_space<vmem>>, vector<1x128xf32>
    %72 = vector.broadcast %70 : vector<8x1xf32> to vector<8x128xf32>
    %73 = vector.broadcast %71 : vector<1x128xf32> to vector<8x128xf32>
    %74 = arith.mulf %72, %73 : vector<8x128xf32>
    %75 = arith.maximumf %69, %74 : vector<8x128xf32>
    %c0_39 = arith.constant 0 : index
    %c12 = arith.constant 12 : index
    %76 = vector.load %arg4[%c0_39, %c12] : memref<8x128xf32, #tpu.memory_space<vmem>>, vector<8x1xf32>
    %c12_40 = arith.constant 12 : index
    %c0_41 = arith.constant 0 : index
    %77 = vector.load %arg5[%c12_40, %c0_41] : memref<128x128xf32, #tpu.memory_space<vmem>>, vector<1x128xf32>
    %78 = vector.broadcast %76 : vector<8x1xf32> to vector<8x128xf32>
    %79 = vector.broadcast %77 : vector<1x128xf32> to vector<8x128xf32>
    %80 = arith.mulf %78, %79 : vector<8x128xf32>
    %81 = arith.maximumf %75, %80 : vector<8x128xf32>
    %c0_42 = arith.constant 0 : index
    %c13 = arith.constant 13 : index
    %82 = vector.load %arg4[%c0_42, %c13] : memref<8x128xf32, #tpu.memory_space<vmem>>, vector<8x1xf32>
    %c13_43 = arith.constant 13 : index
    %c0_44 = arith.constant 0 : index
    %83 = vector.load %arg5[%c13_43, %c0_44] : memref<128x128xf32, #tpu.memory_space<vmem>>, vector<1x128xf32>
    %84 = vector.broadcast %82 : vector<8x1xf32> to vector<8x128xf32>
    %85 = vector.broadcast %83 : vector<1x128xf32> to vector<8x128xf32>
    %86 = arith.mulf %84, %85 : vector<8x128xf32>
    %87 = arith.maximumf %81, %86 : vector<8x128xf32>
    %c0_45 = arith.constant 0 : index
    %c14 = arith.constant 14 : index
    %88 = vector.load %arg4[%c0_45, %c14] : memref<8x128xf32, #tpu.memory_space<vmem>>, vector<8x1xf32>
    %c14_46 = arith.constant 14 : index
    %c0_47 = arith.constant 0 : index
    %89 = vector.load %arg5[%c14_46, %c0_47] : memref<128x128xf32, #tpu.memory_space<vmem>>, vector<1x128xf32>
    %90 = vector.broadcast %88 : vector<8x1xf32> to vector<8x128xf32>
    %91 = vector.broadcast %89 : vector<1x128xf32> to vector<8x128xf32>
    %92 = arith.mulf %90, %91 : vector<8x128xf32>
    %93 = arith.maximumf %87, %92 : vector<8x128xf32>
    %c0_48 = arith.constant 0 : index
    %c15 = arith.constant 15 : index
    %94 = vector.load %arg4[%c0_48, %c15] : memref<8x128xf32, #tpu.memory_space<vmem>>, vector<8x1xf32>
    %c15_49 = arith.constant 15 : index
    %c0_50 = arith.constant 0 : index
    %95 = vector.load %arg5[%c15_49, %c0_50] : memref<128x128xf32, #tpu.memory_space<vmem>>, vector<1x128xf32>
    %96 = vector.broadcast %94 : vector<8x1xf32> to vector<8x128xf32>
    %97 = vector.broadcast %95 : vector<1x128xf32> to vector<8x128xf32>
    %98 = arith.mulf %96, %97 : vector<8x128xf32>
    %99 = arith.maximumf %93, %98 : vector<8x128xf32>
    %c0_51 = arith.constant 0 : index
    %c0_52 = arith.constant 0 : index
    %100 = vector.load %arg7[%c0_51, %c0_52] : memref<8x128xf32, #tpu.memory_space<vmem>>, vector<8x128xf32>
    tpu.vector_store %arg7[%c0_51, %c0_52], %99 {strides = array<i32>} : memref<8x128xf32, #tpu.memory_space<vmem>>, vector<8x128xf32>,
    %c0_i32_53 = arith.constant 0 : i32
    %101 = arith.cmpi eq, %arg1, %c0_i32_53 : i32
    %102 = arith.extui %101 : i1 to i32
    %c0_i32_54 = arith.constant 0 : i32
    %103 = arith.cmpi ne, %102, %c0_i32_54 : i32
    scf.if %103 {
      %cst = arith.constant 0.000000e+00 : f32
      %104 = vector.broadcast %cst : f32 to vector<8x128xf32>
      %c0_55 = arith.constant 0 : index
      %c0_56 = arith.constant 0 : index
      %105 = vector.load %arg2[%c0_55, %c0_56] : memref<8x128xf32, #tpu.memory_space<vmem>>, vector<8x128xf32>
      %c0_57 = arith.constant 0 : index
      %c0_58 = arith.constant 0 : index
      %106 = vector.load %arg3[%c0_57, %c0_58] : memref<8x128xf32, #tpu.memory_space<vmem>>, vector<8x128xf32>
      %c0_59 = arith.constant 0 : index
      %c0_60 = arith.constant 0 : index
      %107 = vector.load %arg7[%c0_59, %c0_60] : memref<8x128xf32, #tpu.memory_space<vmem>>, vector<8x128xf32>
      %cst_61 = arith.constant 1.000000e+00 : f32
      %108 = vector.broadcast %cst_61 : f32 to vector<8x128xf32>
      %109 = arith.subf %108, %106 : vector<8x128xf32>
      %110 = arith.mulf %109, %105 : vector<8x128xf32>
      %111 = arith.mulf %106, %107 : vector<8x128xf32>
      %112 = arith.addf %110, %111 : vector<8x128xf32>
      %cst_62 = arith.constant 1.000000e+00 : f32
      %113 = vector.broadcast %cst_62 : f32 to vector<8x128xf32>
      %114 = arith.subf %113, %112 : vector<8x128xf32>
      %115 = arith.mulf %106, %114 : vector<8x128xf32>
      %116 = math.log %112 : vector<8x128xf32>
      %117 = arith.mulf %115, %116 : vector<8x128xf32>
      %cst_63 = arith.constant 1.000000e+00 : f32
      %118 = vector.broadcast %cst_63 : f32 to vector<8x128xf32>
      %119 = arith.subf %118, %106 : vector<8x128xf32>
      %120 = arith.mulf %112, %112 : vector<8x128xf32>
      %121 = arith.mulf %119, %120 : vector<8x128xf32>
      %cst_64 = arith.constant 1.000000e+00 : f32
      %122 = vector.broadcast %cst_64 : f32 to vector<8x128xf32>
      %123 = arith.subf %122, %112 : vector<8x128xf32>
      %124 = math.log %123 : vector<8x128xf32>
      %125 = arith.mulf %121, %124 : vector<8x128xf32>
      %126 = arith.addf %117, %125 : vector<8x128xf32>
      %127 = tpu.iota {dimensions = array<i32: 1>} : vector<8x128xi32>
      %c0_i32_65 = arith.constant 0 : i32
      %128 = vector.broadcast %c0_i32_65 : i32 to vector<8x128xi32>
      %129 = arith.addi %128, %127 : vector<8x128xi32>
      %c16_i32 = arith.constant 16 : i32
      %130 = vector.broadcast %c16_i32 : i32 to vector<8x128xi32>
      %131 = arith.cmpi slt, %129, %130 : vector<8x128xi32>
      %cst_66 = arith.constant 0.000000e+00 : f32
      %132 = vector.broadcast %cst_66 : f32 to vector<8x128xf32>
      %133 = arith.select %131, %126, %132 : vector<8x128xi1>, vector<8x128xf32>
      %134 = arith.addf %104, %133 : vector<8x128xf32>
      %c0_67 = arith.constant 0 : index
      %c0_68 = arith.constant 0 : index
      %135 = vector.load %arg6[%c0_67, %c0_68] : memref<8x128xf32, #tpu.memory_space<vmem>>, vector<8x128xf32>
      tpu.vector_store %arg6[%c0_67, %c0_68], %134 {strides = array<i32>} : memref<8x128xf32, #tpu.memory_space<vmem>>, vector<8x128xf32>,
    } else {
    }
    return
  }
  func.func @transform_0(%arg0: i32, %arg1: i32) -> (i32, i32) {
    %c0_i32 = arith.constant 0 : i32
    %c0_i32_0 = arith.constant 0 : i32
    return %arg0, %c0_i32 : i32, i32
  }
  func.func @transform_1(%arg0: i32, %arg1: i32) -> (i32, i32) {
    %c0_i32 = arith.constant 0 : i32
    %c0_i32_0 = arith.constant 0 : i32
    return %arg0, %c0_i32 : i32, i32
  }
  func.func @transform_2(%arg0: i32, %arg1: i32) -> (i32, i32) {
    %c0_i32 = arith.constant 0 : i32
    return %arg0, %arg1 : i32, i32
  }
  func.func @transform_3(%arg0: i32, %arg1: i32) -> (i32, i32) {
    %c0_i32 = arith.constant 0 : i32
    %c0_i32_0 = arith.constant 0 : i32
    return %arg1, %c0_i32 : i32, i32
  }
  func.func @transform_4(%arg0: i32, %arg1: i32) -> (i32, i32) {
    %c0_i32 = arith.constant 0 : i32
    %c0_i32_0 = arith.constant 0 : i32
    return %arg0, %c0_i32 : i32, i32
  }
}

</mosaic_0001>

<bundles_post_ra>
// kernel: tpu_custom_call.1
= control target key start
LH: loop header
LB: loop body
LE: loop exit
PB: predicated region body
PF: predicated region fallthrough
CT: control target
= control target key end

     0   :  { %9 = vsyncpa [#allocation4], 0  ;;  %s509_s0 = inlined_call_operand.hbm [shape: f32[8,128], index: 0, kind: input, shape index: {}]   ;;  %s510_s1 = inlined_call_operand.hbm [shape: f32[8,128], index: 1, kind: input, shape index: {}]   ;;  %s511_s2 = inlined_call_operand.hbm [shape: f32[8,128], index: 2, kind: input, shape index: {}]   ;;  %s512_s3 = inlined_call_operand.hbm [shape: f32[128,128], index: 3, kind: input, shape index: {}]   ;;  %s513_s4 = inlined_call_operand.hbm [shape: f32[8,128], index: 4, kind: output, shape index: {}]  }
   0x1   :  { %10 = vsyncpa [#allocation7], 0 }
   0x2   :  { %11 = vsyncpa [#allocation10], 0  ;;  %s29_s17 = sshll.u32 %s510_s1, 4  ;;  %s30_s17 = int_to_ptr.hbm [resolvable:$true] %s29_s17 }
   0x3   :  { %12 = vsyncpa [#allocation5], 0  ;;  %s446_s18 = smov [#allocation6]   ;;  %s18_s22 = sshll.u32 %s509_s0, 4  ;;  %s19_s22 = int_to_ptr.hbm [resolvable:$true] %s18_s22 }
   0x4   :  { %s31_s19 = sshll.u32 %s446_s18, 4  ;;  %s447_s23 = smov [#allocation3]   ;;  %s32_s19 = int_to_ptr.vmem [resolvable:$true] %s31_s19 }
   0x5   :  { %34 = dma.hbm_to_vmem [thread:$0]  %s30_s17, 128, %s32_s19, [#allocation7]  }
   0x6   :  { %s20_s24 = sshll.u32 %s447_s23, 4  ;;  %s40_s27 = sshll.u32 %s511_s2, 4  ;;  %s21_s24 = int_to_ptr.vmem [resolvable:$true] %s20_s24  ;;  %s41_s27 = int_to_ptr.hbm [resolvable:$true] %s40_s27 }
   0x7   :  { %23 = dma.hbm_to_vmem [thread:$0]  %s19_s22, 128, %s21_s24, [#allocation4]  }
   0x8   :  { %s50_s29 = sshll.u32 %s512_s3, 4  ;;  %s448_s30 = smov [#allocation8]   ;;  %s51_s29 = int_to_ptr.hbm [resolvable:$true] %s50_s29 }
   0x9   :  { %s42_s5 = sshll.u32 %s448_s30, 4  ;;  %s449_s0 = smov [#allocation9]   ;;  %s43_s5 = int_to_ptr.vmem [resolvable:$true] %s42_s5 }
   0xa   :  { %45 = dma.hbm_to_vmem [thread:$0]  %s41_s27, 128, %s43_s5, [#allocation7]  }
   0xb   :  { %s52_s6 = sshll.u32 %s449_s0, 4  ;;  %s450_s7 = smov 128   ;;  %s53_s6 = int_to_ptr.vmem [resolvable:$true] %s52_s6 }
   0xc   :  { %s451_s8 = smov 8  }
   0xd   :  { %58 = dma.hbm_to_vmem [thread:$0]  %s51_s29, 2048, %s53_s6, [#allocation10], %s450_s7, %s450_s7, %s451_s8  }
   0xe   :  { %438 = dma.done.wait [#allocation4], 128  }
   0xf   :  { %439 = vsyncadd [#allocation4], 4294967168 }
  0x10   :  { %440 = dma.done.wait [#allocation7], 256  }
  0x11   :  { %441 = vsyncadd [#allocation7], 4294967040 }
  0x12   :  { %442 = dma.done.wait [#allocation10], 2048  }
  0x13   :  { %443 = vsyncadd [#allocation10], 4294965248  ;;  %v452_v0 = vmov 2   ;;  %v453_v1 = vmov 0   ;;  %v454_v2 = vmov 4   ;;  %v81_v3 = vld [vmem:[#allocation8] sm:$0xff] }
  0x14   :  { %283 = vset.pattern.permute.xlu1 %v452_v0  ;;  %281 = vset.pattern.permute.xlu0 %v453_v1  ;;  %v455_v4 = vmov 3   ;;  %v456_v5 = vmov 1   ;;  %v457_v6 = vmov 5   ;;  %v458_v7 = vmov 6   ;;  %v299_v21 = vld [vmem:[#allocation9] ss:$0 sm:$0xff] }
  0x15   :  { %285 = vset.pattern.permute.xlu2 %v454_v2  ;;  %101 = vperm.xlu1 %283, %v81_v3   ;;  %v459_v8 = vmov 8   ;;  %v460_v9 = vmov 7   ;;  %v461_v10 = vmov 9   ;;  %v462_v11 = vmov 13   ;;  %v302_v22 = vld [vmem:[#allocation9 + $0x1] ss:$0 sm:$0xff] }
  0x16   :  { %85 = vperm.xlu0 %281, %v81_v3   ;;  %117 = vperm.xlu2 %285, %v81_v3   ;;  %v463_v12 = vmov 10   ;;  %v464_v13 = vmov 11   ;;  %v465_v14 = vmov 15   ;;  %v466_v15 = vmov 12   ;;  %v298_v23 = vld [vmem:[#allocation9 + $0x2] ss:$0 sm:$0xff] }
  0x17   :  { %v467_v16 = vmov 14   ;;  %v301_v27 = vld [vmem:[#allocation9 + $0x3] ss:$0 sm:$0xff]  ;;  %v300_v30 = vld [vmem:[#allocation9 + $0x4] ss:$0 sm:$0xff]  ;;  %s468_s2 = smov [#allocation11]  }
  0x18   :  { %v303_v35 = vld [vmem:[#allocation9 + $0x5] ss:$0 sm:$0xff]  ;;  %v304_v36 = vld [vmem:[#allocation9 + $0x6] ss:$0 sm:$0xff]  ;;  %v305_v43 = vld [vmem:[#allocation9 + $0x7] ss:$0 sm:$0xff] }
  0x19   :  { %v306_v47 = vld [vmem:[#allocation9 + $0x8] ss:$0 sm:$0xff]  ;;  %v307_v50 = vld [vmem:[#allocation9 + $0x9] ss:$0 sm:$0xff]  ;;  %v308_v55 = vld [vmem:[#allocation9 + $0xa] ss:$0 sm:$0xff] }
  0x1a   :  { %v309_v59 = vld [vmem:[#allocation9 + $0xb] ss:$0 sm:$0xff]  ;;  %v310_v61 = vld [vmem:[#allocation9 + $0xc] ss:$0 sm:$0xff]  ;;  %v311_v2 = vld [vmem:[#allocation9 + $0xd] ss:$0 sm:$0xff] }
  0x1b   :  { %s244_s3 = sshll.u32 %s468_s2, 4  ;;  %s246_s11 = sshll.u32 %s513_s4, 4  ;;  %s245_s3 = int_to_ptr.vmem [resolvable:$true] %s244_s3  ;;  %s247_s11 = int_to_ptr.hbm [resolvable:$true] %s246_s11 }
  0x1d   :  { %284 = vset.pattern.permute.xlu1 %v455_v4 }
  0x1e   :  { %282 = vset.pattern.permute.xlu0 %v456_v5  ;;  %109 = vperm.xlu1 %284, %v81_v3  }
  0x1f   :  { %93 = vperm.xlu0 %282, %v81_v3   ;;  %286 = vset.pattern.permute.xlu2 %v457_v6 }
  0x20   :  { %125 = vperm.xlu2 %286, %v81_v3  }
  0x26   :  { %287 = vset.pattern.permute.xlu1 %v458_v7  ;;  %v312_v7 = vld [vmem:[#allocation9 + $0xe] ss:$0 sm:$0xff] }
  0x27   :  { %289 = vset.pattern.permute.xlu0 %v459_v8  ;;  %133 = vperm.xlu1 %287, %v81_v3   ;;  %v313_v8 = vld [vmem:[#allocation9 + $0xf] ss:$0 sm:$0xff] }
  0x28   :  { %149 = vperm.xlu0 %289, %v81_v3   ;;  %288 = vset.pattern.permute.xlu2 %v460_v9  ;;  %v216_v9 = vld [vmem:[#allocation6] sm:$0xff] }
  0x29   :  { %141 = vperm.xlu2 %288, %v81_v3  }
  0x2f   :  { %290 = vset.pattern.permute.xlu1 %v461_v10 }
  0x30   :  { %294 = vset.pattern.permute.xlu0 %v462_v11  ;;  %157 = vperm.xlu1 %290, %v81_v3  }
  0x31   :  { %189 = vperm.xlu0 %294, %v81_v3   ;;  %291 = vset.pattern.permute.xlu2 %v463_v12 }
  0x32   :  { %165 = vperm.xlu2 %291, %v81_v3  }
  0x38   :  { %292 = vset.pattern.permute.xlu1 %v464_v13 }
  0x39   :  { %297 = vset.pattern.permute.xlu0 %v465_v14  ;;  %173 = vperm.xlu1 %292, %v81_v3  }
  0x3a   :  { %293 = vset.pattern.permute.xlu2 %v466_v15 }
  0x3b   :  { %181 = vperm.xlu2 %293, %v81_v3  }
  0x41   :  { %295 = vset.pattern.permute.xlu1 %v467_v16  ;;  %v215_v16 = vld [vmem:[#allocation3] sm:$0xff] }
  0x42   :  { %197 = vperm.xlu1 %295, %v81_v3  }
  0x43   :  { %296 = vset.pattern.permute.xlu2 %v465_v14  ;;  %v218_v14 = vsub.f32 1.0, %v216_v9 }
  0x44   :  { %205 = vperm.xlu2 %296, %v81_v3  }
  0x70   :  { %v118_v17 = vpop.permute.xlu2 %117 }
  0x71   :  { %v121_v37 = vmul.f32 %v300_v30, %v118_v17 }
  0x7a   :  { %v126_v20 = vpop.permute.xlu2 %125 }
  0x7b   :  { %v129_v40 = vmul.f32 %v303_v35, %v126_v20 }
  0x83   :  { %v142_v32 = vpop.permute.xlu2 %141 }
  0x84   :  { %v145_v46 = vmul.f32 %v305_v43, %v142_v32 }
  0x87   :  { %v102_v18 = vpop.permute.xlu1 %101 }
  0x88   :  { %v86_v19 = vpop.permute.xlu0 %85  ;;  %v105_v29 = vmul.f32 %v298_v23, %v102_v18  ;;  %v219_v18 = vmul.f32 %v218_v14, %v215_v16  ;;  %v233_v23 = vlaneseq }
  0x89   :  { %v89_v24 = vmul.f32 %v299_v21, %v86_v19 }
  0x8c   :  { %v166_v48 = vpop.permute.xlu2 %165 }
  0x8d   :  { %v169_v58 = vmul.f32 %v308_v55, %v166_v48 }
  0x90   :  { %v110_v25 = vpop.permute.xlu1 %109 }
  0x91   :  { %v94_v26 = vpop.permute.xlu0 %93  ;;  %v113_v33 = vmul.f32 %v301_v27, %v110_v25 }
  0x92   :  { %v97_v28 = vmul.f32 %v302_v22, %v94_v26 }
  0x94   :  { %v98_v31 = vmax.f32 %v89_v24, %v97_v28  ;;  %v234_v28 = vand.u32 127, %v233_v23 }
  0x95   :  { %v182_v60 = vpop.permute.xlu2 %181 }
  0x96   :  { %v106_v34 = vmax.f32 %v98_v31, %v105_v29  ;;  %v185_v1 = vmul.f32 %v310_v61, %v182_v60  ;;  %vm235_vm0 = vcmp.lt.s32.totalorder %v234_v28, 16 }
  0x98   :  { %v114_v38 = vmax.f32 %v106_v34, %v113_v33 }
  0x99   :  { %v134_v41 = vpop.permute.xlu1 %133 }
  0x9a   :  { %v122_v39 = vmax.f32 %v114_v38, %v121_v37  ;;  %v137_v42 = vmul.f32 %v304_v36, %v134_v41  ;;  %v150_v49 = vpop.permute.xlu0 %149 }
  0x9b   :  { %v153_v52 = vmul.f32 %v306_v47, %v150_v49 }
  0x9c   :  { %v130_v44 = vmax.f32 %v122_v39, %v129_v40 }
  0x9e   :  { %v138_v45 = vmax.f32 %v130_v44, %v137_v42  ;;  %v206_v10 = vpop.permute.xlu2 %205 }
  0x9f   :  { %v209_v15 = vmul.f32 %v313_v8, %v206_v10 }
  0xa0   :  { %v146_v51 = vmax.f32 %v138_v45, %v145_v46 }
  0xa2   :  { %v158_v53 = vpop.permute.xlu1 %157  ;;  %v154_v56 = vmax.f32 %v146_v51, %v153_v52 }
  0xa3   :  { %v161_v54 = vmul.f32 %v307_v50, %v158_v53  ;;  %v190_v4 = vpop.permute.xlu0 %189 }
  0xa4   :  { %v193_v6 = vmul.f32 %v311_v2, %v190_v4 }
  0xa5   :  { %v162_v57 = vmax.f32 %v154_v56, %v161_v54 }
  0xa7   :  { %v170_v63 = vmax.f32 %v162_v57, %v169_v58 }
  0xab   :  { %v174_v62 = vpop.permute.xlu1 %173 }
  0xac   :  { %v177_v0 = vmul.f32 %v309_v59, %v174_v62 }
  0xae   :  { %v178_v3 = vmax.f32 %v170_v63, %v177_v0 }
  0xb0   :  { %v186_v5 = vmax.f32 %v178_v3, %v185_v1 }
  0xb2   :  { %v194_v12 = vmax.f32 %v186_v5, %v193_v6 }
  0xb4   :  { %v198_v11 = vpop.permute.xlu1 %197 }
  0xb5   :  { %v201_v13 = vmul.f32 %v312_v7, %v198_v11 }
  0xb7   :  { %v202_v17 = vmax.f32 %v194_v12, %v201_v13 }
  0xb9   :  { %v210_v19 = vmax.f32 %v202_v17, %v209_v15 }
  0xbb   :  { %v220_v20 = vmul.f32 %v216_v9, %v210_v19 }
  0xbd   :  { %v221_v21 = vadd.f32 %v220_v20, %v219_v18 }
  0xbf   :  { %v222_v22 = vsub.f32 1.0, %v221_v21  ;;  %314 = vlog2.f32 %v221_v21  ;;  %v227_v24 = vmul.f32 %v221_v21, %v221_v21 }
  0xc1   :  { %316 = vlog2.f32 %v222_v22  ;;  %v223_v29 = vmul.f32 %v222_v22, %v216_v9  ;;  %v228_v30 = vmul.f32 %v227_v24, %v218_v14 }
  0xc5   :  { %v315_v25 = vpop.eup %314 }
  0xc6   :  { %v225_v26 = vmul.f32 0.6931472, %v315_v25 }
  0xc7   :  { %v317_v27 = vpop.eup %316 }
  0xc8   :  { %v230_v31 = vmul.f32 0.6931472, %v317_v27  ;;  %v226_v32 = vmul.f32 %v225_v26, %v223_v29 }
  0xca   :  { %v231_v33 = vmul.f32 %v230_v31, %v228_v30 }
  0xcc   :  { %v232_v34 = vadd.f32 %v231_v33, %v226_v32 }
  0xce   :  { %v236_v35 = vsel %vm235_vm0, %v232_v34, 0.0 }
  0xcf   :  { %238 = vst [vmem:[#allocation11] sm:$0xff] %v236_v35 }
  0xd0   :  { %249 = dma.vmem_to_hbm [thread:$0]  %s245_s3, 128, %s247_s11, [#allocation5]  }
  0xd1   :  { %444 = dma.done.wait [#allocation5], 128  }
  0xd2   :  { %445 = vsyncadd [#allocation5], 4294967168 }
  0xd3   :  { %254 = vsyncpa [#allocation4], 1 }
  0xd4   :  { %255 = vsyncpa [#allocation7], 1 }
  0xd5   :  { %256 = vsyncpa [#allocation10], 1 }
  0xd6   :  { %257 = vsyncpa [#allocation5], 1 }

</bundles_post_ra>
